<compile_context>
chip_gen: v5e
topology: v5e:2x2
jax: 0.10.0
libtpu: 0.0.40
codegen_flags: <defaults>
</compile_context>

<pallas_src>
import jax
import jax.numpy as jnp
from jax.experimental import pallas as pl
from jax.experimental.pallas import tpu as pltpu  # noqa: F401  (TPU backend)

# ---- small synthetic config --------------------------------------------------
B, S, H, NH, FF, L, V = 2, 8, 32, 4, 64, 5, 100   # batch, seq, hidden, heads, ffn, labels, vocab
HD = H // NH
BS = B * S
LP = 128                                          # lane-padded label dim for the output store
LN_EPS = 1e-7                                     # layer_norm_eps from the config override


def _layernorm(x, g, b):
    mu = jnp.mean(x, axis=-1, keepdims=True)
    var = jnp.mean((x - mu) ** 2, axis=-1, keepdims=True)
    return (x - mu) * jax.lax.rsqrt(var + LN_EPS) * g + b


def _gelu(x):
    # tanh approximation; an exact-erf backbone would drift slightly from this.
    c = jnp.sqrt(2.0 / jnp.pi).astype(x.dtype)
    return 0.5 * x * (1.0 + jnp.tanh(c * (x + 0.044715 * x * x * x)))


# vpack row layout (all rows f32, padded to LP=128 lanes):
#   0..5 : ln0_g, ln0_b, ln1_g, ln1_b, ln2_g, ln2_b   (width H)
#   6    : bo   (attention output-proj bias)          (width H)
#   7    : b2   (FFN second bias)                     (width H)
#   8    : b1   (FFN first bias)                      (width FF)
#   9    : bout (head bias, zero-padded to LP)        (width LP)
#   10   : bqkv = [bq | bk | bv]                      (width 3H)
def feedback_kernel(x_ref, amask_ref, vp_ref, wqkv_ref, wo_ref,
                    w1_ref, w2_ref, wout_ref, out_ref):
    x = x_ref[...]                      # (B*S, H)    f32 summed embeddings
    amask = amask_ref[...]              # (NH*B,1,S)  f32 additive mask (0 keep, -1e9 pad)

    ln0_g = vp_ref[0, :H]; ln0_b = vp_ref[1, :H]
    ln1_g = vp_ref[2, :H]; ln1_b = vp_ref[3, :H]
    ln2_g = vp_ref[4, :H]; ln2_b = vp_ref[5, :H]
    bo = vp_ref[6, :H]
    b2 = vp_ref[7, :H]
    b1 = vp_ref[8, :FF]
    bout = vp_ref[9, :]                 # (LP,)
    bqkv = vp_ref[10, :3 * H]           # (3H,)

    # --- embedding LayerNorm (eps = 1e-7) -------------------------------------
    h = _layernorm(x, ln0_g, ln0_b)                                   # (B*S, H) f32

    # --- fused QKV projection: ONE wide bf16 matmul + ONE bias add ------------
    qkv = jnp.dot(h.astype(jnp.bfloat16), wqkv_ref[...],
                  preferred_element_type=jnp.float32) + bqkv          # (B*S, 3H) f32

    def split_heads(base):
        # lane block [base*H:(base+1)*H], heads folded onto the leading batch
        # axis (head-major): row hh*B + b  <->  (head hh, batch b).
        return jnp.concatenate(
            [qkv[:, base * H + hh * HD: base * H + (hh + 1) * HD].reshape(B, S, HD)
             for hh in range(NH)], axis=0)                            # (NH*B, S, HD)

    q = split_heads(0).astype(jnp.bfloat16)
    k = split_heads(1).astype(jnp.bfloat16)
    v = split_heads(2).astype(jnp.bfloat16)

    # --- head-batched attention core: one score matmul, one softmax, one ctx --
    inv_sqrt_hd = jnp.float32(1.0 / (HD ** 0.5))
    sc = jnp.einsum('bqd,bkd->bqk', q, k,
                    preferred_element_type=jnp.float32) * inv_sqrt_hd + amask
    m = jnp.max(sc, axis=-1, keepdims=True)
    e = jnp.exp(sc - m)
    p = e * pl.reciprocal(jnp.sum(e, axis=-1, keepdims=True), approx=True)
    ctx = jnp.einsum('bqk,bkd->bqd', p.astype(jnp.bfloat16), v,
                     preferred_element_type=jnp.float32)              # (NH*B, S, HD) f32

    # --- fold heads back onto lanes, ONE (B*S,H)@(H,H) output projection ------
    ctx_flat = jnp.concatenate(
        [ctx[hh * B:(hh + 1) * B].reshape(BS, HD) for hh in range(NH)],
        axis=-1).astype(jnp.bfloat16)                                 # (B*S, H)
    attn = jnp.dot(ctx_flat, wo_ref[...],
                   preferred_element_type=jnp.float32)                # (B*S, H) f32

    h1 = _layernorm(h + attn + bo, ln1_g, ln1_b)

    # --- feed-forward (2 matmuls, f32 GELU) ------------------------------------
    ff = _gelu(jnp.dot(h1.astype(jnp.bfloat16), w1_ref[...],
                       preferred_element_type=jnp.float32) + b1)
    ff = jnp.dot(ff.astype(jnp.bfloat16), w2_ref[...],
                 preferred_element_type=jnp.float32) + b2
    seq_out = _layernorm(h1 + ff, ln2_g, ln2_b)                       # last_hidden_state

    # --- classification head, computed ONCE -------------------------------------
    # dropout / dropout1..5 are identity at inference, so logits1..logits5 and
    # their average are all identical to this single matmul.  Output is padded
    # to LP=128 lanes for an unmasked lane-dense store; sliced back to L outside.
    out_ref[...] = jnp.dot(seq_out.astype(jnp.bfloat16), wout_ref[...],
                           preferred_element_type=jnp.float32) + bout


def init_params(key):
    ks = jax.random.split(key, 10)
    n = lambda k, shape: (0.02 * jax.random.normal(k, shape)).astype(jnp.float32)
    return {
        'word_emb': n(ks[0], (V, H)),
        'pos_emb':  n(ks[1], (S, H)),
        'ln0_g': jnp.ones((H,), jnp.float32), 'ln0_b': jnp.zeros((H,), jnp.float32),
        'wq': n(ks[2], (H, H)), 'bq': jnp.zeros((H,), jnp.float32),
        'wk': n(ks[3], (H, H)), 'bk': jnp.zeros((H,), jnp.float32),
        'wv': n(ks[4], (H, H)), 'bv': jnp.zeros((H,), jnp.float32),
        'wo': n(ks[5], (H, H)), 'bo': jnp.zeros((H,), jnp.float32),
        'ln1_g': jnp.ones((H,), jnp.float32), 'ln1_b': jnp.zeros((H,), jnp.float32),
        'w1': n(ks[6], (H, FF)), 'b1': jnp.zeros((FF,), jnp.float32),
        'w2': n(ks[7], (FF, H)), 'b2': jnp.zeros((H,), jnp.float32),
        'ln2_g': jnp.ones((H,), jnp.float32), 'ln2_b': jnp.zeros((H,), jnp.float32),
        'wout': n(ks[8], (H, L)), 'bout': jnp.zeros((L,), jnp.float32),
    }


def pack_params(p):
    """One-time host-side packing: 22 tensors -> 8 kernel inputs (weights in bf16)."""
    def row(v):
        v = jnp.asarray(v, jnp.float32).reshape(-1)
        return jnp.pad(v, (0, LP - v.shape[0]))

    vpack = jnp.stack(
        [row(p['ln0_g']), row(p['ln0_b']),
         row(p['ln1_g']), row(p['ln1_b']),
         row(p['ln2_g']), row(p['ln2_b']),
         row(p['bo']), row(p['b2']), row(p['b1']), row(p['bout']),
         row(jnp.concatenate([p['bq'], p['bk'], p['bv']]))],
        axis=0)                                                       # (11, LP) f32

    wqkv = jnp.concatenate([p['wq'], p['wk'], p['wv']], axis=1)       # (H, 3H)
    wout = jnp.zeros((H, LP), jnp.float32).at[:, :L].set(p['wout'])   # (H, LP)

    bf = lambda w: w.astype(jnp.bfloat16)
    return {
        'word_emb': p['word_emb'],
        'pos_emb': p['pos_emb'],
        'vpack': vpack,               # (11, LP)  f32
        'wqkv': bf(wqkv),             # (H, 3H)   bf16
        'wo':   bf(p['wo']),          # (H, H)    bf16
        'w1':   bf(p['w1']),          # (H, FF)   bf16
        'w2':   bf(p['w2']),          # (FF, H)   bf16
        'wout': bf(wout),             # (H, LP)   bf16
    }


@jax.jit
def feedback_forward(ids, mask, packed):
    # glue: embedding gather + position embeddings + additive mask (outside kernel)
    x = jnp.take(packed['word_emb'], ids, axis=0) + packed['pos_emb'][None, :, :]
    x2 = x.reshape(BS, H)                                             # flatten (B,S)->B*S
    amask = (1.0 - mask.astype(jnp.float32)) * jnp.float32(-1e9)      # (B, S)
    # head-major replication so heads live on the attention batch axis
    amask_hb = jnp.tile(amask[None, :, None, :], (NH, 1, 1, 1)).reshape(NH * B, 1, S)

    # Whole problem fits in a fraction of VMEM -> single invocation, no grid,
    # default full-array BlockSpecs.
    # TODO(synk): at real FeedbackModel sizes add a (batch, seq)-tiled grid with
    # dimension_semantics=("parallel", ...) (2nd TC on v7x), set vmem_limit_bytes
    # explicitly, and budget tiles against v7x's 64 MiB VMEM (128-multiple tiles
    # for v5e's MXU / single vst slot).
    padded_logits = pl.pallas_call(
        feedback_kernel,
        out_shape=jax.ShapeDtypeStruct((BS, LP), jnp.float32),
    )(x2, amask_hb, packed['vpack'], packed['wqkv'], packed['wo'],
      packed['w1'], packed['w2'], packed['wout'])

    logits = padded_logits.reshape(B, S, LP)[..., :L]
    # Eval-mode semantics: all dropouts are identity, so logits1..logits5 (and
    # their average) are identical — replicate instead of recomputing 5 heads.
    return logits, logits, logits, logits, logits, logits


if __name__ == "__main__":
    key = jax.random.PRNGKey(0)
    pkey, ikey = jax.random.split(key)
    packed = pack_params(init_params(pkey))

    ids = jax.random.randint(ikey, (B, S), 0, V, dtype=jnp.int32)
    mask = jnp.ones((B, S), dtype=jnp.int32).at[:, S - 2:].set(0)   # pad last two tokens

    outs = feedback_forward(ids, mask, packed)
    jax.block_until_ready(outs)

    logits = outs[0]
    assert logits.shape == (B, S, L)
    assert all(t.shape == (B, S, L) for t in outs[1:])
    print("KERNEL_OK")
</pallas_src>

<mosaic_0001>
module attributes {stable_mosaic.version = 11 : i64} {
  func.func @feedback_kernel(%arg0: memref<16x32xf32, #tpu.memory_space<vmem>>, %arg1: memref<8x1x8xf32, #tpu.memory_space<vmem>>, %arg2: memref<11x128xf32, #tpu.memory_space<vmem>>, %arg3: memref<32x96xbf16, #tpu.memory_space<vmem>>, %arg4: memref<32x32xbf16, #tpu.memory_space<vmem>>, %arg5: memref<32x64xbf16, #tpu.memory_space<vmem>>, %arg6: memref<64x32xbf16, #tpu.memory_space<vmem>>, %arg7: memref<32x128xbf16, #tpu.memory_space<vmem>>, %arg8: memref<16x128xf32, #tpu.memory_space<vmem>>) attributes {dimension_semantics = [], scalar_prefetch = 0 : i64, scratch_operands = 0 : i64, tpu.core_type = #tpu.core_type<tc>} {
    %c0 = arith.constant 0 : index
    %c0_0 = arith.constant 0 : index
    %0 = vector.load %arg0[%c0, %c0_0] : memref<16x32xf32, #tpu.memory_space<vmem>>, vector<16x32xf32>
    %c0_1 = arith.constant 0 : index
    %c0_2 = arith.constant 0 : index
    %c0_3 = arith.constant 0 : index
    %1 = vector.load %arg1[%c0_1, %c0_2, %c0_3] : memref<8x1x8xf32, #tpu.memory_space<vmem>>, vector<8x1x8xf32>
    %c0_4 = arith.constant 0 : index
    %c0_5 = arith.constant 0 : index
    %2 = vector.load %arg2[%c0_4, %c0_5] : memref<11x128xf32, #tpu.memory_space<vmem>>, vector<1x32xf32>
    %3 = vector.shape_cast %2 : vector<1x32xf32> to vector<32xf32>
    %c1 = arith.constant 1 : index
    %c0_6 = arith.constant 0 : index
    %4 = vector.load %arg2[%c1, %c0_6] : memref<11x128xf32, #tpu.memory_space<vmem>>, vector<1x32xf32>
    %5 = vector.shape_cast %4 : vector<1x32xf32> to vector<32xf32>
    %c2 = arith.constant 2 : index
    %c0_7 = arith.constant 0 : index
    %6 = vector.load %arg2[%c2, %c0_7] : memref<11x128xf32, #tpu.memory_space<vmem>>, vector<1x32xf32>
    %7 = vector.shape_cast %6 : vector<1x32xf32> to vector<32xf32>
    %c3 = arith.constant 3 : index
    %c0_8 = arith.constant 0 : index
    %8 = vector.load %arg2[%c3, %c0_8] : memref<11x128xf32, #tpu.memory_space<vmem>>, vector<1x32xf32>
    %9 = vector.shape_cast %8 : vector<1x32xf32> to vector<32xf32>
    %c4 = arith.constant 4 : index
    %c0_9 = arith.constant 0 : index
    %10 = vector.load %arg2[%c4, %c0_9] : memref<11x128xf32, #tpu.memory_space<vmem>>, vector<1x32xf32>
    %11 = vector.shape_cast %10 : vector<1x32xf32> to vector<32xf32>
    %c5 = arith.constant 5 : index
    %c0_10 = arith.constant 0 : index
    %12 = vector.load %arg2[%c5, %c0_10] : memref<11x128xf32, #tpu.memory_space<vmem>>, vector<1x32xf32>
    %13 = vector.shape_cast %12 : vector<1x32xf32> to vector<32xf32>
    %c6 = arith.constant 6 : index
    %c0_11 = arith.constant 0 : index
    %14 = vector.load %arg2[%c6, %c0_11] : memref<11x128xf32, #tpu.memory_space<vmem>>, vector<1x32xf32>
    %15 = vector.shape_cast %14 : vector<1x32xf32> to vector<32xf32>
    %c7 = arith.constant 7 : index
    %c0_12 = arith.constant 0 : index
    %16 = vector.load %arg2[%c7, %c0_12] : memref<11x128xf32, #tpu.memory_space<vmem>>, vector<1x32xf32>
    %17 = vector.shape_cast %16 : vector<1x32xf32> to vector<32xf32>
    %c8 = arith.constant 8 : index
    %c0_13 = arith.constant 0 : index
    %18 = vector.load %arg2[%c8, %c0_13] : memref<11x128xf32, #tpu.memory_space<vmem>>, vector<1x64xf32>
    %19 = vector.shape_cast %18 : vector<1x64xf32> to vector<64xf32>
    %c9 = arith.constant 9 : index
    %c0_14 = arith.constant 0 : index
    %20 = vector.load %arg2[%c9, %c0_14] : memref<11x128xf32, #tpu.memory_space<vmem>>, vector<1x128xf32>
    %21 = vector.shape_cast %20 : vector<1x128xf32> to vector<128xf32>
    %c10 = arith.constant 10 : index
    %c0_15 = arith.constant 0 : index
    %22 = vector.load %arg2[%c10, %c0_15] : memref<11x128xf32, #tpu.memory_space<vmem>>, vector<1x96xf32>
    %23 = vector.shape_cast %22 : vector<1x96xf32> to vector<96xf32>
    %cst = arith.constant dense<0.000000e+00> : vector<16xf32>
    %24 = vector.multi_reduction <add>, %0, %cst [1] : vector<16x32xf32> to vector<16xf32>
    %25 = vector.shape_cast %24 : vector<16xf32> to vector<16x1xf32>
    %cst_16 = arith.constant 3.200000e+01 : f32
    %26 = vector.broadcast %cst_16 : f32 to vector<16x1xf32>
    %27 = arith.divf %25, %26 : vector<16x1xf32>
    %28 = vector.broadcast %27 : vector<16x1xf32> to vector<16x32xf32>
    %29 = arith.subf %0, %28 : vector<16x32xf32>
    %30 = arith.mulf %29, %29 : vector<16x32xf32>
    %cst_17 = arith.constant dense<0.000000e+00> : vector<16xf32>
    %31 = vector.multi_reduction <add>, %30, %cst_17 [1] : vector<16x32xf32> to vector<16xf32>
    %32 = vector.shape_cast %31 : vector<16xf32> to vector<16x1xf32>
    %cst_18 = arith.constant 3.200000e+01 : f32
    %33 = vector.broadcast %cst_18 : f32 to vector<16x1xf32>
    %34 = arith.divf %32, %33 : vector<16x1xf32>
    %35 = vector.broadcast %27 : vector<16x1xf32> to vector<16x32xf32>
    %36 = arith.subf %0, %35 : vector<16x32xf32>
    %cst_19 = arith.constant 1.000000e-07 : f32
    %37 = vector.broadcast %cst_19 : f32 to vector<16x1xf32>
    %38 = arith.addf %34, %37 : vector<16x1xf32>
    %39 = math.rsqrt %38 : vector<16x1xf32>
    %40 = vector.broadcast %39 : vector<16x1xf32> to vector<16x32xf32>
    %41 = arith.mulf %36, %40 : vector<16x32xf32>
    %42 = vector.shape_cast %3 : vector<32xf32> to vector<1x32xf32>
    %43 = vector.broadcast %42 : vector<1x32xf32> to vector<16x32xf32>
    %44 = arith.mulf %41, %43 : vector<16x32xf32>
    %45 = vector.shape_cast %5 : vector<32xf32> to vector<1x32xf32>
    %46 = vector.broadcast %45 : vector<1x32xf32> to vector<16x32xf32>
    %47 = arith.addf %44, %46 : vector<16x32xf32>
    %48 = arith.truncf %47 : vector<16x32xf32> to vector<16x32xbf16>
    %c0_20 = arith.constant 0 : index
    %c0_21 = arith.constant 0 : index
    %49 = vector.load %arg3[%c0_20, %c0_21] : memref<32x96xbf16, #tpu.memory_space<vmem>>, vector<32x96xbf16>
    %cst_22 = arith.constant dense<0.000000e+00> : vector<16x96xf32>
    %50 = tpu.matmul %48, %49, %cst_22 {dimension_numbers = #tpu.dot_dimension_numbers<[1], [0], [0], [1], [0, 0, 1, 1], [], []>} : vector<16x32xbf16>, vector<32x96xbf16>, vector<16x96xf32> -> vector<16x96xf32>
    %51 = vector.shape_cast %23 : vector<96xf32> to vector<1x96xf32>
    %52 = vector.broadcast %51 : vector<1x96xf32> to vector<16x96xf32>
    %53 = arith.addf %50, %52 : vector<16x96xf32>
    %54 = vector.extract_strided_slice %53 {offsets = [0, 0], sizes = [16, 8], strides = [1, 1]} : vector<16x96xf32> to vector<16x8xf32>
    %55 = vector.shape_cast %54 : vector<16x8xf32> to vector<2x8x8xf32>
    %56 = vector.extract_strided_slice %53 {offsets = [0, 8], sizes = [16, 8], strides = [1, 1]} : vector<16x96xf32> to vector<16x8xf32>
    %57 = vector.shape_cast %56 : vector<16x8xf32> to vector<2x8x8xf32>
    %58 = vector.extract_strided_slice %53 {offsets = [0, 16], sizes = [16, 8], strides = [1, 1]} : vector<16x96xf32> to vector<16x8xf32>
    %59 = vector.shape_cast %58 : vector<16x8xf32> to vector<2x8x8xf32>
    %60 = vector.extract_strided_slice %53 {offsets = [0, 24], sizes = [16, 8], strides = [1, 1]} : vector<16x96xf32> to vector<16x8xf32>
    %61 = vector.shape_cast %60 : vector<16x8xf32> to vector<2x8x8xf32>
    %62 = tpu.concatenate %55, %57, %59, %61 in 0 : vector<2x8x8xf32>, vector<2x8x8xf32>, vector<2x8x8xf32>, vector<2x8x8xf32> -> vector<8x8x8xf32>
    %63 = arith.truncf %62 : vector<8x8x8xf32> to vector<8x8x8xbf16>
    %64 = vector.extract_strided_slice %53 {offsets = [0, 32], sizes = [16, 8], strides = [1, 1]} : vector<16x96xf32> to vector<16x8xf32>
    %65 = vector.shape_cast %64 : vector<16x8xf32> to vector<2x8x8xf32>
    %66 = vector.extract_strided_slice %53 {offsets = [0, 40], sizes = [16, 8], strides = [1, 1]} : vector<16x96xf32> to vector<16x8xf32>
    %67 = vector.shape_cast %66 : vector<16x8xf32> to vector<2x8x8xf32>
    %68 = vector.extract_strided_slice %53 {offsets = [0, 48], sizes = [16, 8], strides = [1, 1]} : vector<16x96xf32> to vector<16x8xf32>
    %69 = vector.shape_cast %68 : vector<16x8xf32> to vector<2x8x8xf32>
    %70 = vector.extract_strided_slice %53 {offsets = [0, 56], sizes = [16, 8], strides = [1, 1]} : vector<16x96xf32> to vector<16x8xf32>
    %71 = vector.shape_cast %70 : vector<16x8xf32> to vector<2x8x8xf32>
    %72 = tpu.concatenate %65, %67, %69, %71 in 0 : vector<2x8x8xf32>, vector<2x8x8xf32>, vector<2x8x8xf32>, vector<2x8x8xf32> -> vector<8x8x8xf32>
    %73 = arith.truncf %72 : vector<8x8x8xf32> to vector<8x8x8xbf16>
    %74 = vector.extract_strided_slice %53 {offsets = [0, 64], sizes = [16, 8], strides = [1, 1]} : vector<16x96xf32> to vector<16x8xf32>
    %75 = vector.shape_cast %74 : vector<16x8xf32> to vector<2x8x8xf32>
    %76 = vector.extract_strided_slice %53 {offsets = [0, 72], sizes = [16, 8], strides = [1, 1]} : vector<16x96xf32> to vector<16x8xf32>
    %77 = vector.shape_cast %76 : vector<16x8xf32> to vector<2x8x8xf32>
    %78 = vector.extract_strided_slice %53 {offsets = [0, 80], sizes = [16, 8], strides = [1, 1]} : vector<16x96xf32> to vector<16x8xf32>
    %79 = vector.shape_cast %78 : vector<16x8xf32> to vector<2x8x8xf32>
    %80 = vector.extract_strided_slice %53 {offsets = [0, 88], sizes = [16, 8], strides = [1, 1]} : vector<16x96xf32> to vector<16x8xf32>
    %81 = vector.shape_cast %80 : vector<16x8xf32> to vector<2x8x8xf32>
    %82 = tpu.concatenate %75, %77, %79, %81 in 0 : vector<2x8x8xf32>, vector<2x8x8xf32>, vector<2x8x8xf32>, vector<2x8x8xf32> -> vector<8x8x8xf32>
    %83 = arith.truncf %82 : vector<8x8x8xf32> to vector<8x8x8xbf16>
    "tpu.trace_start"() <{level = 10 : i32, message = "bqd,bkd->bqk"}> : () -> ()
    %cst_23 = arith.constant dense<0.000000e+00> : vector<8x8x8xf32>
    %84 = tpu.matmul %63, %73, %cst_23 {dimension_numbers = #tpu.dot_dimension_numbers<[2], [2], [1], [1], [0, 0, 0, 1, 1, 1], [0], [0]>} : vector<8x8x8xbf16>, vector<8x8x8xbf16>, vector<8x8x8xf32> -> vector<8x8x8xf32>
    "tpu.trace_stop"() : () -> ()
    %cst_24 = arith.constant 0.353553385 : f32
    %85 = vector.broadcast %cst_24 : f32 to vector<8x8x8xf32>
    %86 = arith.mulf %84, %85 : vector<8x8x8xf32>
    %87 = vector.broadcast %1 : vector<8x1x8xf32> to vector<8x8x8xf32>
    %88 = arith.addf %86, %87 : vector<8x8x8xf32>
    %cst_25 = arith.constant dense<0xFF800000> : vector<8x8xf32>
    %89 = vector.multi_reduction <maximumf>, %88, %cst_25 [2] : vector<8x8x8xf32> to vector<8x8xf32>
    %90 = vector.shape_cast %89 : vector<8x8xf32> to vector<8x8x1xf32>
    %91 = vector.broadcast %90 : vector<8x8x1xf32> to vector<8x8x8xf32>
    %92 = arith.subf %88, %91 : vector<8x8x8xf32>
    %93 = math.exp %92 : vector<8x8x8xf32>
    %cst_26 = arith.constant dense<0.000000e+00> : vector<8x8xf32>
    %94 = vector.multi_reduction <add>, %93, %cst_26 [2] : vector<8x8x8xf32> to vector<8x8xf32>
    %95 = vector.shape_cast %94 : vector<8x8xf32> to vector<8x8x1xf32>
    %96 = tpu.reciprocal %95 {approx = true} : vector<8x8x1xf32> -> vector<8x8x1xf32>
    %97 = vector.broadcast %96 : vector<8x8x1xf32> to vector<8x8x8xf32>
    %98 = arith.mulf %93, %97 : vector<8x8x8xf32>
    %99 = arith.truncf %98 : vector<8x8x8xf32> to vector<8x8x8xbf16>
    "tpu.trace_start"() <{level = 10 : i32, message = "bqk,bkd->bqd"}> : () -> ()
    %cst_27 = arith.constant dense<0.000000e+00> : vector<8x8x8xf32>
    %100 = tpu.matmul %99, %83, %cst_27 {dimension_numbers = #tpu.dot_dimension_numbers<[2], [1], [1], [2], [0, 0, 0, 1, 1, 2], [0], [0]>} : vector<8x8x8xbf16>, vector<8x8x8xbf16>, vector<8x8x8xf32> -> vector<8x8x8xf32>
    "tpu.trace_stop"() : () -> ()
    %101 = vector.extract_strided_slice %100 {offsets = [0, 0, 0], sizes = [2, 8, 8], strides = [1, 1, 1]} : vector<8x8x8xf32> to vector<2x8x8xf32>
    %102 = vector.shape_cast %101 : vector<2x8x8xf32> to vector<16x8xf32>
    %103 = vector.extract_strided_slice %100 {offsets = [2, 0, 0], sizes = [2, 8, 8], strides = [1, 1, 1]} : vector<8x8x8xf32> to vector<2x8x8xf32>
    %104 = vector.shape_cast %103 : vector<2x8x8xf32> to vector<16x8xf32>
    %105 = vector.extract_strided_slice %100 {offsets = [4, 0, 0], sizes = [2, 8, 8], strides = [1, 1, 1]} : vector<8x8x8xf32> to vector<2x8x8xf32>
    %106 = vector.shape_cast %105 : vector<2x8x8xf32> to vector<16x8xf32>
    %107 = vector.extract_strided_slice %100 {offsets = [6, 0, 0], sizes = [2, 8, 8], strides = [1, 1, 1]} : vector<8x8x8xf32> to vector<2x8x8xf32>
    %108 = vector.shape_cast %107 : vector<2x8x8xf32> to vector<16x8xf32>
    %109 = tpu.concatenate %102, %104, %106, %108 in 1 : vector<16x8xf32>, vector<16x8xf32>, vector<16x8xf32>, vector<16x8xf32> -> vector<16x32xf32>
    %110 = arith.truncf %109 : vector<16x32xf32> to vector<16x32xbf16>
    %c0_28 = arith.constant 0 : index
    %c0_29 = arith.constant 0 : index
    %111 = vector.load %arg4[%c0_28, %c0_29] : memref<32x32xbf16, #tpu.memory_space<vmem>>, vector<32x32xbf16>
    %cst_30 = arith.constant dense<0.000000e+00> : vector<16x32xf32>
    %112 = tpu.matmul %110, %111, %cst_30 {dimension_numbers = #tpu.dot_dimension_numbers<[1], [0], [0], [1], [0, 0, 1, 1], [], []>} : vector<16x32xbf16>, vector<32x32xbf16>, vector<16x32xf32> -> vector<16x32xf32>
    %113 = arith.addf %47, %112 : vector<16x32xf32>
    %114 = vector.shape_cast %15 : vector<32xf32> to vector<1x32xf32>
    %115 = vector.broadcast %114 : vector<1x32xf32> to vector<16x32xf32>
    %116 = arith.addf %113, %115 : vector<16x32xf32>
    %cst_31 = arith.constant dense<0.000000e+00> : vector<16xf32>
    %117 = vector.multi_reduction <add>, %116, %cst_31 [1] : vector<16x32xf32> to vector<16xf32>
    %118 = vector.shape_cast %117 : vector<16xf32> to vector<16x1xf32>
    %cst_32 = arith.constant 3.200000e+01 : f32
    %119 = vector.broadcast %cst_32 : f32 to vector<16x1xf32>
    %120 = arith.divf %118, %119 : vector<16x1xf32>
    %121 = vector.broadcast %120 : vector<16x1xf32> to vector<16x32xf32>
    %122 = arith.subf %116, %121 : vector<16x32xf32>
    %123 = arith.mulf %122, %122 : vector<16x32xf32>
    %cst_33 = arith.constant dense<0.000000e+00> : vector<16xf32>
    %124 = vector.multi_reduction <add>, %123, %cst_33 [1] : vector<16x32xf32> to vector<16xf32>
    %125 = vector.shape_cast %124 : vector<16xf32> to vector<16x1xf32>
    %cst_34 = arith.constant 3.200000e+01 : f32
    %126 = vector.broadcast %cst_34 : f32 to vector<16x1xf32>
    %127 = arith.divf %125, %126 : vector<16x1xf32>
    %128 = vector.broadcast %120 : vector<16x1xf32> to vector<16x32xf32>
    %129 = arith.subf %116, %128 : vector<16x32xf32>
    %cst_35 = arith.constant 1.000000e-07 : f32
    %130 = vector.broadcast %cst_35 : f32 to vector<16x1xf32>
    %131 = arith.addf %127, %130 : vector<16x1xf32>
    %132 = math.rsqrt %131 : vector<16x1xf32>
    %133 = vector.broadcast %132 : vector<16x1xf32> to vector<16x32xf32>
    %134 = arith.mulf %129, %133 : vector<16x32xf32>
    %135 = vector.shape_cast %7 : vector<32xf32> to vector<1x32xf32>
    %136 = vector.broadcast %135 : vector<1x32xf32> to vector<16x32xf32>
    %137 = arith.mulf %134, %136 : vector<16x32xf32>
    %138 = vector.shape_cast %9 : vector<32xf32> to vector<1x32xf32>
    %139 = vector.broadcast %138 : vector<1x32xf32> to vector<16x32xf32>
    %140 = arith.addf %137, %139 : vector<16x32xf32>
    %141 = arith.truncf %140 : vector<16x32xf32> to vector<16x32xbf16>
    %c0_36 = arith.constant 0 : index
    %c0_37 = arith.constant 0 : index
    %142 = vector.load %arg5[%c0_36, %c0_37] : memref<32x64xbf16, #tpu.memory_space<vmem>>, vector<32x64xbf16>
    %cst_38 = arith.constant dense<0.000000e+00> : vector<16x64xf32>
    %143 = tpu.matmul %141, %142, %cst_38 {dimension_numbers = #tpu.dot_dimension_numbers<[1], [0], [0], [1], [0, 0, 1, 1], [], []>} : vector<16x32xbf16>, vector<32x64xbf16>, vector<16x64xf32> -> vector<16x64xf32>
    %144 = vector.shape_cast %19 : vector<64xf32> to vector<1x64xf32>
    %145 = vector.broadcast %144 : vector<1x64xf32> to vector<16x64xf32>
    %146 = arith.addf %143, %145 : vector<16x64xf32>
    %cst_39 = arith.constant 0.636619746 : f32
    %147 = math.sqrt %cst_39 : f32
    %cst_40 = arith.constant 5.000000e-01 : f32
    %148 = vector.broadcast %cst_40 : f32 to vector<16x64xf32>
    %149 = arith.mulf %148, %146 : vector<16x64xf32>
    %cst_41 = arith.constant 4.471500e-02 : f32
    %150 = vector.broadcast %cst_41 : f32 to vector<16x64xf32>
    %151 = arith.mulf %150, %146 : vector<16x64xf32>
    %152 = arith.mulf %151, %146 : vector<16x64xf32>
    %153 = arith.mulf %152, %146 : vector<16x64xf32>
    %154 = arith.addf %146, %153 : vector<16x64xf32>
    %155 = vector.broadcast %147 : f32 to vector<16x64xf32>
    %156 = arith.mulf %155, %154 : vector<16x64xf32>
    %157 = math.tanh %156 : vector<16x64xf32>
    %cst_42 = arith.constant 1.000000e+00 : f32
    %158 = vector.broadcast %cst_42 : f32 to vector<16x64xf32>
    %159 = arith.addf %158, %157 : vector<16x64xf32>
    %160 = arith.mulf %149, %159 : vector<16x64xf32>
    %161 = arith.truncf %160 : vector<16x64xf32> to vector<16x64xbf16>
    %c0_43 = arith.constant 0 : index
    %c0_44 = arith.constant 0 : index
    %162 = vector.load %arg6[%c0_43, %c0_44] : memref<64x32xbf16, #tpu.memory_space<vmem>>, vector<64x32xbf16>
    %cst_45 = arith.constant dense<0.000000e+00> : vector<16x32xf32>
    %163 = tpu.matmul %161, %162, %cst_45 {dimension_numbers = #tpu.dot_dimension_numbers<[1], [0], [0], [1], [0, 0, 1, 1], [], []>} : vector<16x64xbf16>, vector<64x32xbf16>, vector<16x32xf32> -> vector<16x32xf32>
    %164 = vector.shape_cast %17 : vector<32xf32> to vector<1x32xf32>
    %165 = vector.broadcast %164 : vector<1x32xf32> to vector<16x32xf32>
    %166 = arith.addf %163, %165 : vector<16x32xf32>
    %167 = arith.addf %140, %166 : vector<16x32xf32>
    %cst_46 = arith.constant dense<0.000000e+00> : vector<16xf32>
    %168 = vector.multi_reduction <add>, %167, %cst_46 [1] : vector<16x32xf32> to vector<16xf32>
    %169 = vector.shape_cast %168 : vector<16xf32> to vector<16x1xf32>
    %cst_47 = arith.constant 3.200000e+01 : f32
    %170 = vector.broadcast %cst_47 : f32 to vector<16x1xf32>
    %171 = arith.divf %169, %170 : vector<16x1xf32>
    %172 = vector.broadcast %171 : vector<16x1xf32> to vector<16x32xf32>
    %173 = arith.subf %167, %172 : vector<16x32xf32>
    %174 = arith.mulf %173, %173 : vector<16x32xf32>
    %cst_48 = arith.constant dense<0.000000e+00> : vector<16xf32>
    %175 = vector.multi_reduction <add>, %174, %cst_48 [1] : vector<16x32xf32> to vector<16xf32>
    %176 = vector.shape_cast %175 : vector<16xf32> to vector<16x1xf32>
    %cst_49 = arith.constant 3.200000e+01 : f32
    %177 = vector.broadcast %cst_49 : f32 to vector<16x1xf32>
    %178 = arith.divf %176, %177 : vector<16x1xf32>
    %179 = vector.broadcast %171 : vector<16x1xf32> to vector<16x32xf32>
    %180 = arith.subf %167, %179 : vector<16x32xf32>
    %cst_50 = arith.constant 1.000000e-07 : f32
    %181 = vector.broadcast %cst_50 : f32 to vector<16x1xf32>
    %182 = arith.addf %178, %181 : vector<16x1xf32>
    %183 = math.rsqrt %182 : vector<16x1xf32>
    %184 = vector.broadcast %183 : vector<16x1xf32> to vector<16x32xf32>
    %185 = arith.mulf %180, %184 : vector<16x32xf32>
    %186 = vector.shape_cast %11 : vector<32xf32> to vector<1x32xf32>
    %187 = vector.broadcast %186 : vector<1x32xf32> to vector<16x32xf32>
    %188 = arith.mulf %185, %187 : vector<16x32xf32>
    %189 = vector.shape_cast %13 : vector<32xf32> to vector<1x32xf32>
    %190 = vector.broadcast %189 : vector<1x32xf32> to vector<16x32xf32>
    %191 = arith.addf %188, %190 : vector<16x32xf32>
    %192 = arith.truncf %191 : vector<16x32xf32> to vector<16x32xbf16>
    %c0_51 = arith.constant 0 : index
    %c0_52 = arith.constant 0 : index
    %193 = vector.load %arg7[%c0_51, %c0_52] : memref<32x128xbf16, #tpu.memory_space<vmem>>, vector<32x128xbf16>
    %cst_53 = arith.constant dense<0.000000e+00> : vector<16x128xf32>
    %194 = tpu.matmul %192, %193, %cst_53 {dimension_numbers = #tpu.dot_dimension_numbers<[1], [0], [0], [1], [0, 0, 1, 1], [], []>} : vector<16x32xbf16>, vector<32x128xbf16>, vector<16x128xf32> -> vector<16x128xf32>
    %195 = vector.shape_cast %21 : vector<128xf32> to vector<1x128xf32>
    %196 = vector.broadcast %195 : vector<1x128xf32> to vector<16x128xf32>
    %197 = arith.addf %194, %196 : vector<16x128xf32>
    %c0_54 = arith.constant 0 : index
    %c0_55 = arith.constant 0 : index
    %198 = vector.load %arg8[%c0_54, %c0_55] : memref<16x128xf32, #tpu.memory_space<vmem>>, vector<16x128xf32>
    tpu.vector_store %arg8[%c0_54, %c0_55], %197 {strides = array<i32>} : memref<16x128xf32, #tpu.memory_space<vmem>>, vector<16x128xf32>,
    return
  }
}

</mosaic_0001>

<bundles_post_ra>
// kernel: feedback_forward.1
= control target key start
LH: loop header
LB: loop body
LE: loop exit
PB: predicated region body
PF: predicated region fallthrough
CT: control target
= control target key end

     0   :  { %vm51_vm0 = vcmask 261120   ;;  %v1163_v4 = vmov 32.0   ;;  %s1164_s17 = smov 104   ;;  %s1165_s18 = smov 120   ;;  %vm177_vm8 = vcmask 64512   ;;  %vm506_vm9 = vcmask 1043456   ;;  %s1450_s0 = inlined_call_operand.vmem [shape: f32[16,32], index: 0, kind: input, shape index: {}]   ;;  %s1451_s2 = inlined_call_operand.vmem [shape: f32[11,128], index: 2, kind: input, shape index: {}]   ;;  %s1452_s3 = inlined_call_operand.vmem [shape: bf16[32,96], index: 3, kind: input, shape index: {}]   ;;  %s1453_s1 = inlined_call_operand.vmem [shape: f32[8,1,8], index: 1, kind: input, shape index: {}]   ;;  %s1454_s4 = inlined_call_operand.vmem [shape: bf16[32,32], index: 4, kind: input, shape index: {}]   ;;  %s1455_s5 = inlined_call_operand.vmem [shape: bf16[32,64], index: 5, kind: input, shape index: {}]   ;;  %s1456_s6 = inlined_call_operand.vmem [shape: bf16[64,32], index: 6, kind: input, shape index: {}]   ;;  %s1457_s7 = inlined_call_operand.vmem [shape: bf16[32,128], index: 7, kind: input, shape index: {}]   ;;  %s1458_s8 = inlined_call_operand.vmem [shape: f32[16,128], index: 8, kind: output, shape index: {}]  }
   0x1   :  { %v30_v0 = vld [vmem:[%s1450_s0] sm:$0xff]  ;;  %v31_v2 = vld [vmem:[%s1450_s0 + $0x8] sm:$0xff]  ;;  %1113 = vrcp.f32 %v1163_v4  ;;  %s1166_s19 = smov 112   ;;  %s1167_s20 = smov 96   ;;  %vm696_vm10 = vcmask 130048   ;;  %vm699_vm11 = vcmask 195584  }
   0x2   :  { %v52_v1 = vsel %vm51_vm0, %v30_v0, 0.0  ;;  %v55_v3 = vsel %vm51_vm0, %v31_v2, 0.0  ;;  %v1059_v21 = vld [vmem:[%s1452_s3 + $0x8] sm:$0xff]  ;;  %v1058_v23 = vld [vmem:[%s1452_s3] sm:$0xff]  ;;  %s1168_s21 = smov 64   ;;  %s1170_s14 = smov 24  }
   0x3   :  { %53 = vadd.xlane.f32.xlu0 %v52_v1  ;;  %136 = vmatpush.bf16.msra.mxu0 %v1059_v21  ;;  %v1094_v42 = vld [vmem:[%s1451_s2] ss:$0 sm:$0xff]  ;;  %v1095_v47 = vld [vmem:[%s1451_s2 + $0x1] ss:$0 sm:$0xff]  ;;  %v1096_v52 = vld [vmem:[%s1451_s2 + $0xa] ss:$0 sm:$0xff] }
   0x4   :  { %s1171_s15 = smov 16  }
   0x7   :  { %v1114_v5 = vpop.eup %1113  ;;  %137 = vmatpush.bf16.msra.mxu0 %v1058_v23 }
   0x8   :  { %v59_v6 = vmul.f32 32.0, %v1114_v5  ;;  %vm63_vm1 = vweird.f32 %v1114_v5 }
   0xa   :  { %v60_v7 = vsub.f32 1.0, %v59_v6 }
   0xb   :  { %56 = vadd.xlane.f32.xlu0 %v55_v3 }
   0xc   :  { %v61_v8 = vmul.f32 %v1114_v5, %v60_v7 }
   0xe   :  { %v62_v9 = vadd.f32 %v1114_v5, %v61_v8 }
  0x10   :  { %v1225_v10 = vsel %vm63_vm1, %v1114_v5, %v62_v9 }
  0x76   :  { %v54_v11 = vpop.xlane.xlu0 %53 }
  0x77   :  { %v65_v12 = vmul.f32 %v1225_v10, %v54_v11 }
  0x79   :  { %v67_v13 = vsub.f32 %v30_v0, %v65_v12 }
  0x7b   :  { %v69_v14 = vmul.f32 %v67_v13, %v67_v13 }
  0x7d   :  { %v71_v15 = vsel %vm51_vm0, %v69_v14, 0.0 }
  0x7e   :  { %72 = vadd.xlane.f32.xlu1 %v71_v15  ;;  %v57_v16 = vpop.xlane.xlu0 %56 }
  0x7f   :  { %v66_v17 = vmul.f32 %v1225_v10, %v57_v16 }
  0x81   :  { %v68_v18 = vsub.f32 %v31_v2, %v66_v17 }
  0x83   :  { %v70_v19 = vmul.f32 %v68_v18, %v68_v18 }
  0x85   :  { %v74_v20 = vsel %vm51_vm0, %v70_v19, 0.0 }
  0x86   :  { %75 = vadd.xlane.f32.xlu1 %v74_v20 }
  0xf1   :  { %v73_v22 = vpop.xlane.xlu1 %72 }
  0xf2   :  { %v77_v24 = vmul.f32 %v73_v22, %v1225_v10 }
  0xf4   :  { %v79_v25 = vadd.f32 1e-07, %v77_v24 }
  0xf6   :  { %1115 = vrsqrt.f32 %v79_v25  ;;  %vm87_vm3 = vweird.f32 %v79_v25 }
  0xf9   :  { %v76_v26 = vpop.xlane.xlu1 %75 }
  0xfa   :  { %v78_v27 = vmul.f32 %v76_v26, %v1225_v10 }
  0xfc   :  { %v1116_v28 = vpop.eup %1115  ;;  %v80_v29 = vadd.f32 1e-07, %v78_v27 }
  0xfd   :  { %v82_v30 = vmul.f32 %v1116_v28, %v79_v25  ;;  %vm88_vm2 = vweird.f32 %v1116_v28 }
  0xfe   :  { %1117 = vrsqrt.f32 %v80_v29  ;;  %vm89_vm4 = vmor %vm87_vm3, %vm88_vm2  ;;  %vm97_vm6 = vweird.f32 %v80_v29  ;;  %vm878_vm3 = vcmask 523264  }
  0xff   :  { %v83_v31 = vmul.f32 %v1116_v28, %v82_v30 }
 0x101   :  { %v84_v32 = vmul.f32 0.5, %v83_v31 }
 0x103   :  { %v85_v33 = vsub.f32 1.5, %v84_v32 }
 0x104   :  { %v1118_v34 = vpop.eup %1117 }
 0x105   :  { %v86_v35 = vmul.f32 %v1116_v28, %v85_v33  ;;  %v92_v36 = vmul.f32 %v1118_v34, %v80_v29  ;;  %vm98_vm5 = vweird.f32 %v1118_v34 }
 0x106   :  { %vm99_vm7 = vmor %vm97_vm6, %vm98_vm5 }
 0x107   :  { %v93_v37 = vmul.f32 %v1118_v34, %v92_v36  ;;  %v90_v38 = vsel %vm89_vm4, %v1116_v28, %v86_v35 }
 0x108   :  { %v101_v41 = vmul.f32 %v90_v38, %v67_v13 }
 0x109   :  { %v94_v39 = vmul.f32 0.5, %v93_v37 }
 0x10a   :  { %v104_v46 = vmul.f32 %v1094_v42, %v101_v41 }
 0x10b   :  { %v95_v40 = vsub.f32 1.5, %v94_v39 }
 0x10c   :  { %v1245_v49 = vadd.f32 %v1095_v47, %v104_v46  ;;  %v1097_v46 = vld [vmem:[%s1453_s1 + $0x1] ss:$0 sm:$0xff] }
 0x10d   :  { %v96_v43 = vmul.f32 %v1118_v34, %v95_v40 }
 0x10f   :  { %v100_v44 = vsel %vm99_vm7, %v1118_v34, %v96_v43 }
 0x110   :  { %v102_v45 = vmul.f32 %v100_v44, %v68_v18 }
 0x112   :  { %v105_v48 = vmul.f32 %v1094_v42, %v102_v45 }
 0x114   :  { %v1247_v50 = vadd.f32 %v1095_v47, %v105_v48 }
 0x116   :  { %v109_v51 = vpack.c.bf16 %v1247_v50, %v1245_v49 }
 0x118   :  { %997 = vmatmul.msk.bf16.vlgmr.msra.gmra.mxu0 %vm51_vm0, %v109_v51  ;;  %v1098_v51 = vld [vmem:[%s1453_s1] ss:$0 sm:$0xff] }
 0x195   :  { %v139_v53 = vpop.f32.mrf.mxu0 }
 0x196   :  { %v140_v54 = vadd.f32 %v1096_v52, %v139_v53 }
 0x198   :  { %158 = vrot.lane.b32.xlu1 %v140_v54, %s1164_s17  ;;  %146 = vrot.lane.b32.xlu2 %v140_v54, %s1165_s18  ;;  %v164_v60 = vpack.c.bf16 %v140_v54, %v140_v54 }
 0x19a   :  { %v173_v61 = vunpack.c.l.b16 %v164_v60 }
 0x19c   :  { %v174_v62 = vpack.c.b16 %v173_v61, %v173_v61 }
 0x19d   :  { %v141_v55 = vpop.f32.mrf.mxu0 }
 0x19e   :  { %v142_v56 = vadd.f32 %v1096_v52, %v141_v55 }
 0x1a0   :  { %154 = vrot.lane.b32.xlu0 %v142_v56, %s1166_s19  ;;  %148 = vrot.lane.b32.xlu2 %v142_v56, %s1165_s18  ;;  %v165_v57 = vpack.c.bf16 %v142_v56, %v142_v56 }
 0x1a2   :  { %v198_v58 = vunpack.c.l.b16 %v165_v57 }
 0x1a4   :  { %v199_v59 = vpack.c.b16 %v198_v58, %v198_v58 }
 0x1a8   :  { %152 = vrot.lane.b32.xlu2 %v140_v54, %s1166_s19 }
 0x1b0   :  { %160 = vrot.lane.b32.xlu2 %v142_v56, %s1164_s17 }
 0x1b8   :  { %200 = vrot.lane.b32.xlu2 %v199_v59, %s1167_s20 }
 0x1c0   :  { %175 = vrot.lane.b32.xlu2 %v174_v62, %s1167_s20 }
 0x1f2   :  { %v147_v63 = vpop.permute.xlu2 %146 }
 0x1f3   :  { %v166_v0 = vpack.c.bf16 %v147_v63, %v147_v63 }
 0x1f5   :  { %v222_v1 = vunpack.c.l.b16 %v166_v0 }
 0x1f7   :  { %v223_v2 = vpack.c.b16 %v222_v1, %v222_v1 }
 0x1f9   :  { %224 = vrot.lane.b32.xlu0 %v223_v2, %s1167_s20 }
 0x1fa   :  { %v149_v3 = vpop.permute.xlu2 %148 }
 0x1fb   :  { %v167_v4 = vpack.c.bf16 %v149_v3, %v149_v3  ;;  %v1100_v3 = vld [vmem:[%s1453_s1 + $0x4] ss:$0 sm:$0xff] }
 0x1fd   :  { %v246_v5 = vunpack.c.l.b16 %v167_v4 }
 0x1ff   :  { %v1258_v6 = vpack.c.b16 %v246_v5, %v246_v5 }
 0x201   :  { %248 = vrot.lane.b32.xlu1 %v1258_v6, %s1167_s20 }
 0x202   :  { %v153_v7 = vpop.permute.xlu2 %152 }
 0x203   :  { %v168_v8 = vpack.c.bf16 %v153_v7, %v153_v7 }
 0x205   :  { %v270_v9 = vunpack.c.l.b16 %v168_v8 }
 0x207   :  { %v1262_v11 = vpack.c.b16 %v270_v9, %v270_v9  ;;  %v1102_v9 = vld [vmem:[%s1453_s1 + $0x3] ss:$0 sm:$0xff] }
 0x209   :  { %272 = vrot.lane.b32.xlu1 %v1262_v11, %s1167_s20 }
 0x20a   :  { %v159_v12 = vpop.permute.xlu1 %158  ;;  %v161_v13 = vpop.permute.xlu2 %160 }
 0x20b   :  { %v170_v14 = vpack.c.bf16 %v159_v12, %v159_v12  ;;  %v171_v22 = vpack.c.bf16 %v161_v13, %v161_v13 }
 0x20d   :  { %v318_v15 = vunpack.c.l.b16 %v170_v14  ;;  %v342_v25 = vunpack.c.l.b16 %v171_v22 }
 0x20f   :  { %v1266_v16 = vpack.c.b16 %v318_v15, %v318_v15  ;;  %v1279_v27 = vpack.c.b16 %v342_v25, %v342_v25 }
 0x211   :  { %544 = vrot.lane.b32.xlu1 %v223_v2, %s1168_s21  ;;  %320 = vrot.lane.b32.xlu2 %v1266_v16, %s1167_s20 }
 0x212   :  { %v155_v17 = vpop.permute.xlu0 %154  ;;  %v201_v18 = vpop.permute.xlu2 %200 }
 0x213   :  { %v169_v19 = vpack.c.bf16 %v155_v17, %v155_v17  ;;  %v206_v20 = vsel %vm177_vm8, %v201_v18, 0 }
 0x214   :  { %215 = vmatpush.bf16.xpose.msra.mxu2 %v206_v20 }
 0x215   :  { %v294_v21 = vunpack.c.l.b16 %v169_v19 }
 0x217   :  { %v1272_v23 = vpack.c.b16 %v294_v21, %v294_v21 }
 0x219   :  { %296 = vrot.lane.b32.xlu0 %v1272_v23, %s1167_s20  ;;  %523 = vrot.lane.b32.xlu2 %v199_v59, %s1168_s21 }
 0x21a   :  { %v176_v24 = vpop.permute.xlu2 %175 }
 0x21b   :  { %999 = vmatmul.msk.bf16.vlgmr.msra.gmra.mxu2 %vm177_vm8, %v165_v57  ;;  %v182_v26 = vsel %vm177_vm8, %v176_v24, 0 }
 0x21c   :  { %191 = vmatpush.bf16.xpose.msra.mxu1 %v182_v26 }
 0x221   :  { %344 = vrot.lane.b32.xlu0 %v1279_v27, %s1167_s20 }
 0x223   :  { %998 = vmatmul.msk.bf16.vlgmr.msra.gmra.mxu1 %vm177_vm8, %v164_v60  ;;  %v1099_v60 = vld [vmem:[%s1453_s1 + $0x2] ss:$0 sm:$0xff] }
 0x229   :  { %501 = vrot.lane.b32.xlu0 %v174_v62, %s1168_s21 }
 0x26b   :  { %v225_v28 = vpop.permute.xlu0 %224  ;;  %v321_v29 = vpop.permute.xlu2 %320 }
 0x26c   :  { %v230_v30 = vsel %vm177_vm8, %v225_v28, 0  ;;  %v326_v31 = vsel %vm177_vm8, %v321_v29, 0 }
 0x26d   :  { %239 = vmatpush.bf16.xpose.msra.mxu3 %v230_v30 }
 0x273   :  { %v249_v32 = vpop.permute.xlu1 %248  ;;  %v524_v38 = vpop.permute.xlu2 %523 }
 0x274   :  { %1000 = vmatmul.msk.bf16.vlgmr.msra.gmra.mxu3 %vm177_vm8, %v166_v0  ;;  %v254_v33 = vsel %vm177_vm8, %v249_v32, 0  ;;  %v529_v41 = vsel %vm506_vm9, %v524_v38, 0 }
 0x275   :  { %335 = vmatpush.bf16.xpose.msrb.mxu3 %v326_v31  ;;  %263 = vmatpush.bf16.xpose.msrb.mxu0 %v254_v33 }
 0x27b   :  { %v273_v34 = vpop.permute.xlu1 %272 }
 0x27c   :  { %1001 = vmatmul.msk.bf16.vlgmr.msrb.gmra.mxu0 %vm177_vm8, %v167_v4  ;;  %v278_v35 = vsel %vm177_vm8, %v273_v34, 0 }
 0x27d   :  { %287 = vmatpush.bf16.xpose.msrb.mxu1 %v278_v35 }
 0x283   :  { %v545_v36 = vpop.permute.xlu1 %544 }
 0x284   :  { %v550_v37 = vsel %vm506_vm9, %v545_v36, 0  ;;  %1002 = vmatmul.msk.bf16.vlgmr.msrb.gmra.mxu1 %vm177_vm8, %v168_v8  ;;  %1004 = vmatmul.msk.bf16.vlgmr.msrb.gmra.mxu3 %vm177_vm8, %v170_v14  ;;  %v1101_v14 = vld [vmem:[%s1453_s1 + $0x6] ss:$0 sm:$0xff] }
 0x285   :  { %559 = vmatpush.bf16.msra.mxu3 %v550_v37 }
 0x28b   :  { %v297_v39 = vpop.permute.xlu0 %296 }
 0x28c   :  { %v302_v40 = vsel %vm177_vm8, %v297_v39, 0 }
 0x28d   :  { %311 = vmatpush.bf16.xpose.msrb.mxu2 %v302_v40 }
 0x293   :  { %v345_v42 = vpop.permute.xlu0 %344 }
 0x294   :  { %v350_v43 = vsel %vm177_vm8, %v345_v42, 0  ;;  %1003 = vmatmul.msk.bf16.vlgmr.msrb.gmra.mxu2 %vm177_vm8, %v169_v19 }
 0x295   :  { %538 = vmatpush.bf16.msra.mxu2 %v529_v41  ;;  %359 = vmatpush.bf16.xpose.msra.mxu0 %v350_v43  ;;  %v1103_v41 = vld [vmem:[%s1453_s1 + $0x5] ss:$0 sm:$0xff] }
 0x29b   :  { %v502_v44 = vpop.permute.xlu0 %501 }
 0x29c   :  { %v508_v45 = vsel %vm506_vm9, %v502_v44, 0  ;;  %1005 = vmatmul.msk.bf16.vlgmr.msra.gmra.mxu0 %vm177_vm8, %v171_v22 }
 0x29d   :  { %517 = vmatpush.bf16.msra.mxu1 %v508_v45  ;;  %v1104_v45 = vld [vmem:[%s1453_s1 + $0x7] ss:$0 sm:$0xff]  ;;  %s1169_s1 = smov 8  }
 0x29e   :  { %v217_v47 = vpop.f32.mrf.mxu2 }
 0x29f   :  { %v366_v48 = vmul.f32 0.35355338, %v217_v47 }
 0x2a0   :  { %v193_v52 = vpop.f32.mrf.mxu1 }
 0x2a1   :  { %v365_v53 = vmul.f32 0.35355338, %v193_v52  ;;  %v398_v54 = vadd.f32 %v1097_v46, %v366_v48 }
 0x2a3   :  { %v408_v55 = vsel %vm177_vm8, %v398_v54, -inf  ;;  %v397_v56 = vadd.f32 %v1098_v51, %v365_v53 }
 0x2a4   :  { %409 = vmax.xlane.f32.xlu2 %v408_v55 }
 0x2a5   :  { %v405_v57 = vsel %vm177_vm8, %v397_v56, -inf }
 0x2a6   :  { %v219_v58 = vpop.f32.mrf.mxu2  ;;  %406 = vmax.xlane.f32.xlu0 %v405_v57 }
 0x2a8   :  { %v195_v59 = vpop.f32.mrf.mxu1 }
 0x2f7   :  { %v241_v61 = vpop.f32.mrf.mxu3 }
 0x2f8   :  { %v367_v62 = vmul.f32 0.35355338, %v241_v61 }
 0x2f9   :  { %v265_v63 = vpop.f32.mrf.mxu0 }
 0x2fa   :  { %v399_v0 = vadd.f32 %v1099_v60, %v367_v62  ;;  %v368_v12 = vmul.f32 0.35355338, %v265_v63 }
 0x2fc   :  { %v411_v1 = vsel %vm177_vm8, %v399_v0, -inf  ;;  %v400_v20 = vadd.f32 %v1102_v9, %v368_v12 }
 0x2fd   :  { %412 = vmax.xlane.f32.xlu1 %v411_v1 }
 0x2fe   :  { %v414_v22 = vsel %vm177_vm8, %v400_v20, -inf }
 0x2ff   :  { %v243_v2 = vpop.f32.mrf.mxu3 }
 0x301   :  { %v267_v4 = vpop.f32.mrf.mxu0  ;;  %v289_v5 = vpop.f32.mrf.mxu1 }
 0x302   :  { %v369_v7 = vmul.f32 0.35355338, %v289_v5 }
 0x304   :  { %v401_v8 = vadd.f32 %v1100_v3, %v369_v7 }
 0x306   :  { %v417_v13 = vsel %vm177_vm8, %v401_v8, -inf }
 0x307   :  { %418 = vmax.xlane.f32.xlu2 %v417_v13  ;;  %v337_v15 = vpop.f32.mrf.mxu3 }
 0x308   :  { %v371_v17 = vmul.f32 0.35355338, %v337_v15 }
 0x309   :  { %v291_v18 = vpop.f32.mrf.mxu1 }
 0x30a   :  { %v403_v19 = vadd.f32 %v1101_v14, %v371_v17 }
 0x30c   :  { %v423_v21 = vsel %vm177_vm8, %v403_v19, -inf }
 0x30d   :  { %424 = vmax.xlane.f32.xlu0 %v423_v21 }
 0x30f   :  { %415 = vmax.xlane.f32.xlu2 %v414_v22  ;;  %v339_v24 = vpop.f32.mrf.mxu3 }
 0x317   :  { %v313_v25 = vpop.f32.mrf.mxu2  ;;  %v410_v26 = vpop.xlane.xlu2 %409 }
 0x318   :  { %v430_v28 = vsub.f32 %v398_v54, %v410_v26  ;;  %v370_v39 = vmul.f32 0.35355338, %v313_v25 }
 0x319   :  { %v361_v29 = vpop.f32.mrf.mxu0  ;;  %v407_v30 = vpop.xlane.xlu0 %406 }
 0x31a   :  { %v439_v31 = vmul.f32 1.442695, %v430_v28  ;;  %v429_v32 = vsub.f32 %v397_v56, %v407_v30  ;;  %v402_v42 = vadd.f32 %v1103_v41, %v370_v39  ;;  %v372_v43 = vmul.f32 0.35355338, %v361_v29 }
 0x31c   :  { %1119 = vpow2.f32 %v439_v31  ;;  %v437_v33 = vmul.f32 1.442695, %v429_v32  ;;  %v420_v44 = vsel %vm177_vm8, %v402_v42, -inf  ;;  %v404_v46 = vadd.f32 %v1104_v45, %v372_v43 }
 0x31e   :  { %1121 = vpow2.f32 %v437_v33  ;;  %v426_v47 = vsel %vm177_vm8, %v404_v46, -inf }
 0x31f   :  { %v315_v34 = vpop.f32.mrf.mxu2 }
 0x321   :  { %v363_v35 = vpop.f32.mrf.mxu0 }
 0x322   :  { %v1120_v36 = vpop.eup %1119 }
 0x323   :  { %v456_v37 = vsel %vm177_vm8, %v1120_v36, 0.0 }
 0x324   :  { %v1122_v38 = vpop.eup %1121  ;;  %457 = vadd.xlane.f32.xlu0 %v456_v37 }
 0x325   :  { %v453_v40 = vsel %vm177_vm8, %v1122_v38, 0.0 }
 0x326   :  { %454 = vadd.xlane.f32.xlu1 %v453_v40 }
 0x327   :  { %565 = vrot.lane.b32.xlu2 %v1258_v6, %s1168_s21 }
 0x32e   :  { %421 = vmax.xlane.f32.xlu1 %v420_v44 }
 0x336   :  { %427 = vmax.xlane.f32.xlu1 %v426_v47 }
 0x34f   :  { %607 = vrot.lane.b32.xlu1 %v1272_v23, %s1168_s21 }
 0x370   :  { %v413_v48 = vpop.xlane.xlu1 %412 }
 0x371   :  { %v431_v6 = vsub.f32 %v399_v0, %v413_v48 }
 0x373   :  { %v441_v54 = vmul.f32 1.442695, %v431_v6 }
 0x37a   :  { %v419_v51 = vpop.xlane.xlu2 %418 }
 0x37b   :  { %v433_v52 = vsub.f32 %v401_v8, %v419_v51 }
 0x37d   :  { %v445_v53 = vmul.f32 1.442695, %v433_v52 }
 0x37f   :  { %1123 = vpow2.f32 %v445_v53 }
 0x380   :  { %v425_v55 = vpop.xlane.xlu0 %424  ;;  %1125 = vpow2.f32 %v441_v54 }
 0x381   :  { %v435_v56 = vsub.f32 %v403_v19, %v425_v55 }
 0x382   :  { %v416_v57 = vpop.xlane.xlu2 %415 }
 0x383   :  { %v449_v58 = vmul.f32 1.442695, %v435_v56  ;;  %v432_v59 = vsub.f32 %v400_v20, %v416_v57 }
 0x385   :  { %v1338_v60 = vpop.eup %1123  ;;  %1127 = vpow2.f32 %v449_v58  ;;  %v443_v61 = vmul.f32 1.442695, %v432_v59 }
 0x386   :  { %v465_v23 = vsel %vm177_vm8, %v1338_v60, 0.0  ;;  %v1126_v62 = vpop.eup %1125 }
 0x387   :  { %1129 = vpow2.f32 %v443_v61  ;;  %466 = vadd.xlane.f32.xlu2 %v465_v23  ;;  %v459_v4 = vsel %vm177_vm8, %v1126_v62, 0.0 }
 0x38a   :  { %v566_v63 = vpop.permute.xlu2 %565 }
 0x38b   :  { %v1128_v0 = vpop.eup %1127  ;;  %v571_v1 = vsel %vm506_vm9, %v566_v63, 0 }
 0x38c   :  { %580 = vmatpush.bf16.msrb.mxu0 %v571_v1  ;;  %v471_v2 = vsel %vm177_vm8, %v1128_v0, 0.0 }
 0x38d   :  { %v1130_v3 = vpop.eup %1129  ;;  %472 = vadd.xlane.f32.xlu1 %v471_v2 }
 0x38e   :  { %v462_v5 = vsel %vm177_vm8, %v1130_v3, 0.0 }
 0x38f   :  { %460 = vadd.xlane.f32.xlu2 %v459_v4  ;;  %463 = vadd.xlane.f32.xlu0 %v462_v5 }
 0x397   :  { %v458_v7 = vpop.xlane.xlu0 %457 }
 0x398   :  { %1131 = vrcp.f32 %v458_v7 }
 0x399   :  { %v455_v8 = vpop.xlane.xlu1 %454 }
 0x39a   :  { %1133 = vrcp.f32 %v455_v8 }
 0x39e   :  { %v1132_v9 = vpop.eup %1131 }
 0x39f   :  { %v486_v12 = vmul.f32 %v1132_v9, %v1120_v36 }
 0x3a0   :  { %v1134_v13 = vpop.eup %1133 }
 0x3a1   :  { %v494_v14 = vpack.c.bf16 %v486_v12, %v486_v12  ;;  %v485_v15 = vmul.f32 %v1134_v13, %v1122_v38  ;;  %v422_v17 = vpop.xlane.xlu1 %421 }
 0x3a2   :  { %v434_v18 = vsub.f32 %v402_v42, %v422_v17 }
 0x3a3   :  { %v493_v19 = vpack.c.bf16 %v485_v15, %v485_v15  ;;  %1007 = vmatmul.msk.bf16.vlgmr.msra.gmra.mxu2 %vm177_vm8, %v494_v14 }
 0x3a4   :  { %v447_v20 = vmul.f32 1.442695, %v434_v18  ;;  %v1061_v18 = vld [vmem:[%s1454_s4 + $0x8] sm:$0xff] }
 0x3a5   :  { %1006 = vmatmul.msk.bf16.vlgmr.msra.gmra.mxu1 %vm177_vm8, %v493_v19  ;;  %v1060_v19 = vld [vmem:[%s1454_s4] sm:$0xff] }
 0x3a6   :  { %1135 = vpow2.f32 %v447_v20  ;;  %649 = vrot.lane.b32.xlu1 %v1279_v27, %s1168_s21 }
 0x3a7   :  { %628 = vrot.lane.b32.xlu2 %v1266_v16, %s1168_s21 }
 0x3a9   :  { %v428_v21 = vpop.xlane.xlu1 %427 }
 0x3aa   :  { %v436_v22 = vsub.f32 %v404_v46, %v428_v21 }
 0x3ac   :  { %v1136_v24 = vpop.eup %1135  ;;  %v451_v25 = vmul.f32 1.442695, %v436_v22 }
 0x3ad   :  { %v468_v26 = vsel %vm177_vm8, %v1136_v24, 0.0 }
 0x3ae   :  { %1137 = vpow2.f32 %v451_v25  ;;  %469 = vadd.xlane.f32.xlu0 %v468_v26 }
 0x3b4   :  { %v1138_v28 = vpop.eup %1137 }
 0x3b5   :  { %v474_v29 = vsel %vm177_vm8, %v1138_v28, 0.0 }
 0x3b6   :  { %475 = vadd.xlane.f32.xlu0 %v474_v29 }
 0x3c1   :  { %v608_v30 = vpop.permute.xlu1 %607 }
 0x3c2   :  { %v613_v31 = vsel %vm506_vm9, %v608_v30, 0 }
 0x3c3   :  { %622 = vmatpush.bf16.msrb.mxu2 %v613_v31 }
 0x3ca   :  { %586 = vrot.lane.b32.xlu0 %v1262_v11, %s1168_s21 }
 0x3fa   :  { %v467_v16 = vpop.xlane.xlu2 %466 }
 0x400   :  { %v473_v40 = vpop.xlane.xlu1 %472 }
 0x402   :  { %v464_v27 = vpop.xlane.xlu0 %463  ;;  %v461_v32 = vpop.xlane.xlu2 %460 }
 0x403   :  { %1139 = vrcp.f32 %v464_v27 }
 0x404   :  { %1141 = vrcp.f32 %v461_v32 }
 0x405   :  { %1143 = vrcp.f32 %v473_v40 }
 0x409   :  { %v1140_v33 = vpop.eup %1139 }
 0x40a   :  { %v1142_v34 = vpop.eup %1141  ;;  %v488_v35 = vmul.f32 %v1140_v33, %v1130_v3  ;;  %v629_v36 = vpop.permute.xlu2 %628 }
 0x40b   :  { %v487_v37 = vmul.f32 %v1142_v34, %v1126_v62  ;;  %v634_v38 = vsel %vm506_vm9, %v629_v36, 0  ;;  %v1144_v11 = vpop.eup %1143  ;;  %v1105_v36 = vld [vmem:[%s1451_s2 + $0x6] ss:$0 sm:$0xff] }
 0x40c   :  { %v496_v39 = vpack.c.bf16 %v488_v35, %v488_v35  ;;  %643 = vmatpush.bf16.msrb.mxu3 %v634_v38  ;;  %v491_v43 = vmul.f32 %v1144_v11, %v1128_v0 }
 0x40d   :  { %v495_v41 = vpack.c.bf16 %v487_v37, %v487_v37 }
 0x40e   :  { %1009 = vmatmul.msk.bf16.vlgmr.msrb.gmra.mxu0 %vm177_vm8, %v496_v39  ;;  %v499_v45 = vpack.c.bf16 %v491_v43, %v491_v43 }
 0x40f   :  { %1008 = vmatmul.msk.bf16.vlgmr.msra.gmra.mxu3 %vm177_vm8, %v495_v41 }
 0x418   :  { %v650_v42 = vpop.permute.xlu1 %649 }
 0x419   :  { %v655_v44 = vsel %vm506_vm9, %v650_v42, 0 }
 0x41a   :  { %664 = vmatpush.bf16.msra.mxu0 %v655_v44 }
 0x41f   :  { %1012 = vmatmul.msk.bf16.vlgmr.msrb.gmra.mxu3 %vm177_vm8, %v499_v45 }
 0x421   :  { %v470_v46 = vpop.xlane.xlu0 %469 }
 0x422   :  { %1145 = vrcp.f32 %v470_v46  ;;  %v519_v47 = vpop.f32.mrf.mxu1 }
 0x426   :  { %v540_v48 = vpop.f32.mrf.mxu2 }
 0x428   :  { %v1146_v51 = vpop.eup %1145 }
 0x429   :  { %v490_v52 = vmul.f32 %v1146_v51, %v1136_v24  ;;  %v476_v6 = vpop.xlane.xlu0 %475 }
 0x42a   :  { %1147 = vrcp.f32 %v476_v6  ;;  %v521_v53 = vpop.f32.mrf.mxu1 }
 0x42b   :  { %v498_v54 = vpack.c.bf16 %v490_v52, %v490_v52  ;;  %1149 = vrcp.f32 %v467_v16 }
 0x42d   :  { %1011 = vmatmul.msk.bf16.vlgmr.msrb.gmra.mxu2 %vm177_vm8, %v498_v54 }
 0x42e   :  { %v542_v55 = vpop.f32.mrf.mxu2 }
 0x430   :  { %v1148_v56 = vpop.eup %1147 }
 0x431   :  { %v492_v57 = vmul.f32 %v1148_v56, %v1138_v28  ;;  %v1150_v59 = vpop.eup %1149 }
 0x432   :  { %v489_v61 = vmul.f32 %v1150_v59, %v1338_v60 }
 0x433   :  { %v500_v58 = vpack.c.bf16 %v492_v57, %v492_v57  ;;  %v1062_v57 = vld [vmem:[%s1455_s5] sm:$0xff] }
 0x434   :  { %v497_v63 = vpack.c.bf16 %v489_v61, %v489_v61 }
 0x435   :  { %1013 = vmatmul.msk.bf16.vlgmr.msra.gmra.mxu0 %vm177_vm8, %v500_v58 }
 0x43c   :  { %v587_v23 = vpop.permute.xlu0 %586 }
 0x43d   :  { %v592_v62 = vsel %vm506_vm9, %v587_v23, 0 }
 0x43e   :  { %601 = vmatpush.bf16.msrb.mxu1 %v592_v62 }
 0x441   :  { %1010 = vmatmul.msk.bf16.vlgmr.msrb.gmra.mxu1 %vm177_vm8, %v497_v63 }
 0x442   :  { %728 = vmatpush.bf16.msra.mxu1 %v1061_v18 }
 0x446   :  { %729 = vmatpush.bf16.msra.mxu1 %v1060_v19 }
 0x48b   :  { %v582_v0 = vpop.f32.mrf.mxu0 }
 0x492   :  { %v561_v1 = vpop.f32.mrf.mxu3 }
 0x493   :  { %v1079_v2 = vpack.i.bf16 %v582_v0, %v561_v1  ;;  %v584_v3 = vpop.f32.mrf.mxu0 }
 0x495   :  { %1080 = vrot.lane.b32.xlu0 %v1079_v2, %s1169_s1 }
 0x49a   :  { %v563_v4 = vpop.f32.mrf.mxu3 }
 0x4a2   :  { %v645_v5 = vpop.f32.mrf.mxu3 }
 0x4aa   :  { %v647_v7 = vpop.f32.mrf.mxu3 }
 0x4b0   :  { %v624_v8 = vpop.f32.mrf.mxu2 }
 0x4b2   :  { %v666_v9 = vpop.f32.mrf.mxu0 }
 0x4b3   :  { %v1089_v12 = vpack.i.bf16 %v666_v9, %v645_v5 }
 0x4b5   :  { %1090 = vrot.lane.b32.xlu1 %v1089_v12, %s1170_s14  ;;  %v1106_v12 = vld [vmem:[%s1451_s2 + $0x2] ss:$0 sm:$0xff] }
 0x4b8   :  { %v626_v60 = vpop.f32.mrf.mxu2 }
 0x4ba   :  { %v668_v13 = vpop.f32.mrf.mxu0 }
 0x4be   :  { %v603_v14 = vpop.f32.mrf.mxu1 }
 0x4bf   :  { %v1084_v15 = vpack.i.bf16 %v624_v8, %v603_v14 }
 0x4c1   :  { %1085 = vrot.lane.b32.xlu2 %v1084_v15, %s1171_s15  ;;  %v1107_v15 = vld [vmem:[%s1451_s2 + $0x3] ss:$0 sm:$0xff] }
 0x4c6   :  { %v605_v17 = vpop.f32.mrf.mxu1 }
 0x507   :  { %v1081_v20 = vpop.permute.xlu0 %1080 }
 0x508   :  { %v1083_v22 = vunpack.i.h.bf16 %v1081_v20  ;;  %v1082_v24 = vunpack.i.l.bf16 %v1081_v20 }
 0x50a   :  { %v695_v29 = vsel %vm177_vm8, %v540_v48, %v1083_v22  ;;  %v694_v30 = vsel %vm177_vm8, %v519_v47, %v1082_v24  ;;  %v1067_v24 = vld [vmem:[%s1456_s6 + $0x18] sm:$0xff] }
 0x50b   :  { %886 = vmatpush.bf16.msra.mxu3 %v1067_v24 }
 0x51b   :  { %v1086_v21 = vpop.permute.xlu2 %1085 }
 0x51c   :  { %v1088_v25 = vunpack.i.h.bf16 %v1086_v21  ;;  %v1087_v26 = vunpack.i.l.bf16 %v1086_v21 }
 0x51e   :  { %v698_v27 = vsel %vm696_vm10, %v695_v29, %v1088_v25  ;;  %v697_v32 = vsel %vm696_vm10, %v694_v30, %v1087_v26  ;;  %v1066_v25 = vld [vmem:[%s1456_s6 + $0x10] sm:$0xff]  ;;  %v1065_v26 = vld [vmem:[%s1456_s6 + $0x8] sm:$0xff] }
 0x51f   :  { %887 = vmatpush.bf16.msra.mxu3 %v1066_v25  ;;  %v1108_v29 = vld [vmem:[%s1451_s2 + $0x8] ss:$0 sm:$0xff] }
 0x523   :  { %888 = vmatpush.bf16.msra.mxu3 %v1065_v26 }
 0x527   :  { %v1091_v28 = vpop.permute.xlu1 %1090 }
 0x528   :  { %v1093_v31 = vunpack.i.h.bf16 %v1091_v28  ;;  %v1092_v16 = vunpack.i.l.bf16 %v1091_v28  ;;  %v1064_v28 = vld [vmem:[%s1456_s6] sm:$0xff] }
 0x529   :  { %889 = vmatpush.bf16.msra.mxu3 %v1064_v28 }
 0x52a   :  { %v700_v33 = vsel %vm699_vm11, %v697_v32, %v1092_v16  ;;  %v701_v34 = vsel %vm699_vm11, %v698_v27, %v1093_v31 }
 0x52b   :  { %v702_v35 = vpack.c.bf16 %v701_v34, %v700_v33 }
 0x52d   :  { %1022 = vmatmul.msk.bf16.vlgmr.msra.gmra.mxu1 %vm51_vm0, %v702_v35 }
 0x5aa   :  { %v731_v37 = vpop.f32.mrf.mxu1 }
 0x5ab   :  { %v736_v38 = vadd.f32 %v731_v37, %v1245_v49 }
 0x5ad   :  { %v739_v39 = vadd.f32 %v1105_v36, %v736_v38 }
 0x5af   :  { %v741_v40 = vsel %vm51_vm0, %v739_v39, 0.0 }
 0x5b0   :  { %742 = vadd.xlane.f32.xlu0 %v741_v40 }
 0x5b2   :  { %v733_v41 = vpop.f32.mrf.mxu1 }
 0x5b3   :  { %v737_v11 = vadd.f32 %v733_v41, %v1247_v50  ;;  %v1063_v50 = vld [vmem:[%s1455_s5 + $0x8] sm:$0xff] }
 0x5b4   :  { %818 = vmatpush.bf16.msra.mxu2 %v1063_v50 }
 0x5b5   :  { %v740_v42 = vadd.f32 %v1105_v36, %v737_v11 }
 0x5b7   :  { %v744_v43 = vsel %vm51_vm0, %v740_v42, 0.0 }
 0x5b8   :  { %745 = vadd.xlane.f32.xlu2 %v744_v43  ;;  %819 = vmatpush.bf16.msra.mxu2 %v1062_v57 }
 0x623   :  { %v743_v44 = vpop.xlane.xlu0 %742 }
 0x624   :  { %v747_v45 = vmul.f32 %v743_v44, %v1225_v10 }
 0x626   :  { %v749_v46 = vsub.f32 %v739_v39, %v747_v45 }
 0x628   :  { %v751_v47 = vmul.f32 %v749_v46, %v749_v46 }
 0x62a   :  { %v753_v48 = vsel %vm51_vm0, %v751_v47, 0.0 }
 0x62b   :  { %754 = vadd.xlane.f32.xlu1 %v753_v48  ;;  %v746_v49 = vpop.xlane.xlu2 %745 }
 0x62c   :  { %v748_v51 = vmul.f32 %v746_v49, %v1225_v10 }
 0x62e   :  { %v750_v52 = vsub.f32 %v740_v42, %v748_v51  ;;  %v1109_v51 = vld [vmem:[%s1451_s2 + $0x7] ss:$0 sm:$0xff] }
 0x630   :  { %v752_v6 = vmul.f32 %v750_v52, %v750_v52 }
 0x632   :  { %v756_v53 = vsel %vm51_vm0, %v752_v6, 0.0 }
 0x633   :  { %757 = vadd.xlane.f32.xlu0 %v756_v53 }
 0x69e   :  { %v755_v54 = vpop.xlane.xlu1 %754 }
 0x69f   :  { %v759_v55 = vmul.f32 %v755_v54, %v1225_v10 }
 0x6a1   :  { %v761_v56 = vadd.f32 1e-07, %v759_v55 }
 0x6a3   :  { %1151 = vrsqrt.f32 %v761_v56  ;;  %vm769_vm13 = vweird.f32 %v761_v56 }
 0x6a6   :  { %v758_v58 = vpop.xlane.xlu0 %757 }
 0x6a7   :  { %v760_v59 = vmul.f32 %v758_v58, %v1225_v10 }
 0x6a9   :  { %v1152_v61 = vpop.eup %1151  ;;  %v762_v23 = vadd.f32 1e-07, %v760_v59 }
 0x6aa   :  { %v764_v62 = vmul.f32 %v1152_v61, %v761_v56  ;;  %vm770_vm12 = vweird.f32 %v1152_v61 }
 0x6ab   :  { %1153 = vrsqrt.f32 %v762_v23  ;;  %vm771_vm14 = vmor %vm769_vm13, %vm770_vm12  ;;  %vm779_vm1 = vweird.f32 %v762_v23 }
 0x6ac   :  { %v765_v63 = vmul.f32 %v1152_v61, %v764_v62 }
 0x6ae   :  { %v766_v0 = vmul.f32 0.5, %v765_v63 }
 0x6b0   :  { %v767_v1 = vsub.f32 1.5, %v766_v0 }
 0x6b1   :  { %v1154_v2 = vpop.eup %1153 }
 0x6b2   :  { %v768_v3 = vmul.f32 %v1152_v61, %v767_v1  ;;  %v774_v4 = vmul.f32 %v1154_v2, %v762_v23  ;;  %vm780_vm15 = vweird.f32 %v1154_v2 }
 0x6b3   :  { %vm781_vm2 = vmor %vm779_vm1, %vm780_vm15 }
 0x6b4   :  { %v775_v5 = vmul.f32 %v1154_v2, %v774_v4  ;;  %v772_v7 = vsel %vm771_vm14, %v1152_v61, %v768_v3  ;;  %v1069_v4 = vld [vmem:[%s1457_s7 + $0x8] sm:$0xff] }
 0x6b5   :  { %v783_v60 = vmul.f32 %v772_v7, %v749_v46  ;;  %975 = vmatpush.bf16.msrb.mxu0 %v1069_v4 }
 0x6b6   :  { %v776_v8 = vmul.f32 0.5, %v775_v5 }
 0x6b7   :  { %v786_v17 = vmul.f32 %v1106_v12, %v783_v60 }
 0x6b8   :  { %v777_v9 = vsub.f32 1.5, %v776_v8 }
 0x6b9   :  { %v789_v20 = vadd.f32 %v1107_v15, %v786_v17 }
 0x6ba   :  { %v778_v13 = vmul.f32 %v1154_v2, %v777_v9  ;;  %v1068_v9 = vld [vmem:[%s1457_s7] sm:$0xff] }
 0x6bb   :  { %976 = vmatpush.bf16.msrb.mxu0 %v1068_v9 }
 0x6bc   :  { %v782_v14 = vsel %vm781_vm2, %v1154_v2, %v778_v13 }
 0x6bd   :  { %v784_v18 = vmul.f32 %v782_v14, %v750_v52 }
 0x6bf   :  { %v787_v19 = vmul.f32 %v1106_v12, %v784_v18 }
 0x6c1   :  { %v790_v21 = vadd.f32 %v1107_v15, %v787_v19 }
 0x6c3   :  { %v791_v22 = vpack.c.bf16 %v790_v21, %v789_v20 }
 0x6c5   :  { %1031 = vmatmul.msk.bf16.vlgmr.msra.gmra.mxu2 %vm51_vm0, %v791_v22 }
 0x748   :  { %v821_v30 = vpop.f32.mrf.mxu2 }
 0x749   :  { %v822_v31 = vadd.f32 %v1108_v29, %v821_v30 }
 0x74b   :  { %v828_v16 = vmul.f32 0.044715, %v822_v31  ;;  %v826_v44 = vmul.f32 0.5, %v822_v31 }
 0x74d   :  { %v830_v27 = vmul.f32 %v828_v16, %v822_v31  ;;  %v1111_v16 = vld [vmem:[%s1451_s2 + $0x5] ss:$0 sm:$0xff] }
 0x74f   :  { %v832_v32 = vmul.f32 %v830_v27, %v822_v31 }
 0x750   :  { %v823_v33 = vpop.f32.mrf.mxu2 }
 0x751   :  { %v834_v34 = vadd.f32 %v832_v32, %v822_v31  ;;  %v824_v35 = vadd.f32 %v1108_v29, %v823_v33 }
 0x753   :  { %v829_v36 = vmul.f32 0.044715, %v824_v35  ;;  %v836_v37 = vmul.f32 0.7978845, %v834_v34  ;;  %v827_v45 = vmul.f32 0.5, %v824_v35 }
 0x755   :  { %v831_v38 = vmul.f32 %v829_v36, %v824_v35  ;;  %1155 = vtanh.f32 %v836_v37  ;;  %v1112_v37 = vld [vmem:[%s1451_s2 + $0x9] ss:$0 sm:$0xff] }
 0x757   :  { %v833_v39 = vmul.f32 %v831_v38, %v824_v35 }
 0x759   :  { %v835_v40 = vadd.f32 %v833_v39, %v824_v35 }
 0x75b   :  { %v837_v41 = vmul.f32 0.7978845, %v835_v40  ;;  %v1156_v11 = vpop.eup %1155 }
 0x75c   :  { %v840_v42 = vadd.f32 1.0, %v1156_v11 }
 0x75d   :  { %1157 = vtanh.f32 %v837_v41 }
 0x75e   :  { %v842_v47 = vmul.f32 %v840_v42, %v826_v44 }
 0x763   :  { %v1158_v43 = vpop.eup %1157 }
 0x764   :  { %v841_v46 = vadd.f32 1.0, %v1158_v43 }
 0x766   :  { %v843_v48 = vmul.f32 %v841_v46, %v827_v45 }
 0x768   :  { %v844_v49 = vpack.c.bf16 %v843_v48, %v842_v47 }
 0x76a   :  { %1048 = vmatmul.msk.bf16.vlgmr.msra.gmra.mxu3 %vm878_vm3, %v844_v49 }
 0x7ed   :  { %v891_v52 = vpop.f32.mrf.mxu3 }
 0x7ee   :  { %v892_v6 = vadd.f32 %v1109_v51, %v891_v52 }
 0x7f0   :  { %v896_v53 = vadd.f32 %v892_v6, %v789_v20 }
 0x7f2   :  { %v898_v50 = vsel %vm51_vm0, %v896_v53, 0.0 }
 0x7f3   :  { %899 = vadd.xlane.f32.xlu2 %v898_v50 }
 0x7f5   :  { %v893_v54 = vpop.f32.mrf.mxu3 }
 0x7f6   :  { %v894_v55 = vadd.f32 %v1109_v51, %v893_v54 }
 0x7f8   :  { %v897_v56 = vadd.f32 %v894_v55, %v790_v21 }
 0x7fa   :  { %v901_v57 = vsel %vm51_vm0, %v897_v56, 0.0 }
 0x7fb   :  { %902 = vadd.xlane.f32.xlu1 %v901_v57 }
 0x866   :  { %v900_v58 = vpop.xlane.xlu2 %899 }
 0x867   :  { %v904_v59 = vmul.f32 %v900_v58, %v1225_v10 }
 0x869   :  { %v906_v61 = vsub.f32 %v896_v53, %v904_v59 }
 0x86b   :  { %v908_v23 = vmul.f32 %v906_v61, %v906_v61 }
 0x86d   :  { %v910_v62 = vsel %vm51_vm0, %v908_v23, 0.0 }
 0x86e   :  { %v903_v63 = vpop.xlane.xlu1 %902  ;;  %911 = vadd.xlane.f32.xlu0 %v910_v62 }
 0x86f   :  { %v905_v0 = vmul.f32 %v903_v63, %v1225_v10 }
 0x871   :  { %v907_v1 = vsub.f32 %v897_v56, %v905_v0 }
 0x873   :  { %v909_v2 = vmul.f32 %v907_v1, %v907_v1 }
 0x875   :  { %v913_v3 = vsel %vm51_vm0, %v909_v2, 0.0 }
 0x876   :  { %914 = vadd.xlane.f32.xlu2 %v913_v3 }
 0x8e1   :  { %v912_v5 = vpop.xlane.xlu0 %911 }
 0x8e2   :  { %v916_v7 = vmul.f32 %v912_v5, %v1225_v10 }
 0x8e4   :  { %v918_v8 = vadd.f32 1e-07, %v916_v7 }
 0x8e6   :  { %1159 = vrsqrt.f32 %v918_v8  ;;  %vm926_vm5 = vweird.f32 %v918_v8 }
 0x8e9   :  { %v915_v12 = vpop.xlane.xlu2 %914 }
 0x8ea   :  { %v917_v60 = vmul.f32 %v915_v12, %v1225_v10  ;;  %v1110_v10 = vld [vmem:[%s1451_s2 + $0x4] ss:$0 sm:$0xff] }
 0x8ec   :  { %v1160_v13 = vpop.eup %1159  ;;  %v919_v14 = vadd.f32 1e-07, %v917_v60 }
 0x8ed   :  { %v921_v15 = vmul.f32 %v1160_v13, %v918_v8  ;;  %vm927_vm4 = vweird.f32 %v1160_v13 }
 0x8ee   :  { %1161 = vrsqrt.f32 %v919_v14  ;;  %vm928_vm6 = vmor %vm926_vm5, %vm927_vm4  ;;  %vm936_vm8 = vweird.f32 %v919_v14 }
 0x8ef   :  { %v922_v17 = vmul.f32 %v1160_v13, %v921_v15 }
 0x8f1   :  { %v923_v18 = vmul.f32 0.5, %v922_v17 }
 0x8f3   :  { %v924_v19 = vsub.f32 1.5, %v923_v18 }
 0x8f4   :  { %v1162_v20 = vpop.eup %1161 }
 0x8f5   :  { %v925_v21 = vmul.f32 %v1160_v13, %v924_v19  ;;  %v931_v22 = vmul.f32 %v1162_v20, %v919_v14  ;;  %vm937_vm7 = vweird.f32 %v1162_v20 }
 0x8f6   :  { %vm938_vm9 = vmor %vm936_vm8, %vm937_vm7 }
 0x8f7   :  { %v932_v24 = vmul.f32 %v1162_v20, %v931_v22  ;;  %v929_v25 = vsel %vm928_vm6, %v1160_v13, %v925_v21 }
 0x8f8   :  { %v940_v29 = vmul.f32 %v929_v25, %v906_v61 }
 0x8f9   :  { %v933_v26 = vmul.f32 0.5, %v932_v24 }
 0x8fa   :  { %v943_v27 = vmul.f32 %v1110_v10, %v940_v29 }
 0x8fb   :  { %v934_v28 = vsub.f32 1.5, %v933_v26 }
 0x8fc   :  { %v946_v34 = vadd.f32 %v1111_v16, %v943_v27 }
 0x8fd   :  { %v935_v30 = vmul.f32 %v1162_v20, %v934_v28 }
 0x8ff   :  { %v939_v31 = vsel %vm938_vm9, %v1162_v20, %v935_v30 }
 0x900   :  { %v941_v32 = vmul.f32 %v939_v31, %v907_v1 }
 0x902   :  { %v944_v33 = vmul.f32 %v1110_v10, %v941_v32 }
 0x904   :  { %v947_v35 = vadd.f32 %v1111_v16, %v944_v33 }
 0x906   :  { %v948_v36 = vpack.c.bf16 %v947_v35, %v946_v34 }
 0x908   :  { %1057 = vmatmul.msk.bf16.vlgmr.msrb.gmra.mxu0 %vm51_vm0, %v948_v36 }
 0x985   :  { %v978_v38 = vpop.f32.mrf.mxu0 }
 0x986   :  { %v979_v39 = vadd.f32 %v1112_v37, %v978_v38 }
 0x988   :  { %983 = vst [vmem:[%s1458_s8] sm:$0xff] %v979_v39 }
 0x98d   :  { %v980_v40 = vpop.f32.mrf.mxu0 }
 0x98e   :  { %v981_v41 = vadd.f32 %v1112_v37, %v980_v40 }
 0x990   :  { %984 = vst [vmem:[%s1458_s8 + $0x8] sm:$0xff] %v981_v41 }

</bundles_post_ra>
